<compile_context>
chip_gen: v6e
topology: v6e:2x2x1
jax: 0.10.0
libtpu: 0.0.40
codegen_flags: <defaults>
</compile_context>

<pallas_src>
import numpy as np
import jax
import jax.numpy as jnp
from jax.experimental import pallas as pl
from jax.experimental.pallas import tpu as pltpu


# ----------------------------- graph constants ------------------------------
EDGE_NODE_VALS = {
    'pedestrian_graph_2': {
        'edge_indices': [[0, 0], [1, 1], [2, 2], [3, 3], [4, 4], [5, 5], [6, 6],
                         [7, 7], [8, 8], [9, 9], [10, 10], [11, 11], [12, 12],
                         [0, 1], [0, 2], [1, 2], [1, 3], [3, 5], [2, 4], [4, 6],
                         [1, 7], [2, 8], [7, 8], [7, 9], [8, 10], [9, 11], [10, 12]],
        'node_num': 13, 'edge_num': 14},
}

LAP_NODE_ID_DIM = 42  # = 2 * half_pos_enc_dim (half = 21)


# ------------------------------- Pallas kernel ------------------------------
def _data_embedding_kernel(lhs_ref, w_ref, bias_ref, out_ref):
    """Fused circular Conv1d(k=3) + additive embeddings.

    lhs_ref:  (B*L, 3C)  rows = [x_{l-1} | x_l | x_{l+1}]  (assembled in wrapper)
    w_ref:    (3C, D)    stacked conv taps [W_{l-1}; W_l; W_{l+1}]
    bias_ref: (B*L, D)   pre-tiled (laplacian-linear + bias + node-type embed)
    out_ref:  (B*L, D)   lane-dense output slab (D multiple of 128)
    """
    out_ref[...] = (
        jnp.dot(lhs_ref[...], w_ref[...], preferred_element_type=jnp.float32)
        + bias_ref[...]
    ).astype(out_ref.dtype)


# ------------------------- one-time constant precompute ---------------------
def build_constants(pe, w_conv, w_lap, b_lap, type_tab, node_num, batch):
    """Batch-invariant precompute, run ONCE at init (not per forward call).

    pe:       (L, 42)  Laplacian positional encoding (batch-invariant)
    w_conv:   (3, C, D) Conv1d taps (tap 0 -> x_{l-1}, 1 -> x_l, 2 -> x_{l+1})
    w_lap:    (42, D), b_lap: (1, D), type_tab: (2, D)
    Returns (w_stack (3C, D), bias_tiled (batch*L, D)).
    """
    L = pe.shape[0]
    C = w_conv.shape[1]
    D = w_lap.shape[-1]
    hp = jax.lax.Precision.HIGHEST
    lap = jnp.dot(pe, w_lap, precision=hp) + b_lap                      # (L, D)
    is_edge_tok = (jnp.arange(L) >= node_num)[:, None]                  # (L, 1)
    type_emb = jnp.where(is_edge_tok, type_tab[1:2, :], type_tab[0:1, :])  # (L, D)
    bias = (lap + type_emb).astype(jnp.float32)                         # (L, D)
    bias_tiled = jnp.tile(bias, (batch, 1))                             # (B*L, D)
    w_stack = w_conv.reshape(3 * C, D).astype(jnp.float32)              # (3C, D)
    return w_stack, bias_tiled


# --------------------------------- forward -----------------------------------
def data_embedding_forward(x, w_stack, bias_tiled):
    """x: (B, L, C) f32; w_stack: (3C, D); bias_tiled: (B*L, D).  -> (B, L, D)."""
    B, L, C = x.shape
    D = w_stack.shape[-1]

    # Assemble the fused circular-conv LHS in the wrapper (tiny: ~2.6 KB), so the
    # kernel sees one lane-dense slab and does MXU + VPU work only.
    x_prev = jnp.roll(x, 1, axis=1)
    x_next = jnp.roll(x, -1, axis=1)
    lhs = jnp.concatenate([x_prev, x, x_next], axis=-1).reshape(B * L, 3 * C)

    out2d = pl.pallas_call(
        _data_embedding_kernel,
        out_shape=jax.ShapeDtypeStruct((B * L, D), jnp.float32),
        in_specs=[
            pl.BlockSpec(memory_space=pltpu.MemorySpace.VMEM),   # lhs  (B*L, 3C)
            pl.BlockSpec(memory_space=pltpu.MemorySpace.VMEM),   # w    (3C, D)
            pl.BlockSpec(memory_space=pltpu.MemorySpace.VMEM),   # bias (B*L, D)
        ],
        out_specs=pl.BlockSpec(memory_space=pltpu.MemorySpace.VMEM),
    )(lhs, w_stack, bias_tiled)

    return out2d.reshape(B, L, D)


data_embedding_forward_jit = jax.jit(data_embedding_forward)


# ------------------------- parameter / PE construction ----------------------
def build_laplacian_pe(edge_indices, node_num, half_dim):
    """Deterministic stand-in for get_pe_2d (not provided in the reference).

    Builds the symmetric-normalized graph Laplacian from the non-self-loop
    edges, takes its eigenvectors, zero-pads them to half_dim columns, and for
    each token (u, v) concatenates eigvec[u] and eigvec[v] -> (E, 2*half_dim).
    """
    # TODO(synk): get_pe_2d is undefined in the reference source; this is a
    # deterministic tokengt-style reconstruction of the 2D Laplacian PE.
    E = len(edge_indices)
    A = np.zeros((node_num, node_num), dtype=np.float64)
    for u, v in edge_indices[node_num:]:
        A[u, v] = 1.0
        A[v, u] = 1.0
    deg = A.sum(axis=1)
    dinv = np.where(deg > 0, 1.0 / np.sqrt(deg), 0.0)
    L = np.eye(node_num) - (dinv[:, None] * A) * dinv[None, :]
    _, eigvec = np.linalg.eigh(L)                       # deterministic
    eigvec_pad = np.zeros((node_num, half_dim), dtype=np.float32)
    eigvec_pad[:, :node_num] = eigvec.astype(np.float32)
    pe = np.zeros((E, 2 * half_dim), dtype=np.float32)
    for e, (u, v) in enumerate(edge_indices):
        pe[e, :half_dim] = eigvec_pad[u]
        pe[e, half_dim:] = eigvec_pad[v]
    return jnp.asarray(pe)                              # (E, 2*half_dim)


# --------------------------------- reference ---------------------------------
def reference_forward(x, pe, w_conv, w_lap, b_lap, type_tab, node_num):
    hp = jax.lax.Precision.HIGHEST
    x_prev = jnp.roll(x, 1, axis=1)
    x_next = jnp.roll(x, -1, axis=1)
    conv = (jnp.einsum('blc,cd->bld', x_prev, w_conv[0], precision=hp)
            + jnp.einsum('blc,cd->bld', x, w_conv[1], precision=hp)
            + jnp.einsum('blc,cd->bld', x_next, w_conv[2], precision=hp))
    lap = jnp.dot(pe, w_lap, precision=hp) + b_lap                 # (L, D)
    L = x.shape[1]
    idx = (jnp.arange(L) >= node_num).astype(jnp.int32)
    type_emb = type_tab[idx]                                       # (L, D)
    return conv + lap[None] + type_emb[None]


# ----------------------------------- main ------------------------------------
if __name__ == "__main__":
    graph = EDGE_NODE_VALS['pedestrian_graph_2']
    edge_indices = graph['edge_indices']
    node_num = graph['node_num']
    E = len(edge_indices)          # 27 tokens (13 nodes + 14 edges)

    # d_model = 128 keeps the output lane-dense (full 128-lane unmasked stores).
    B, C_IN, D_MODEL = 2, 4, 128
    key = jax.random.PRNGKey(0)
    kx, kc, kw, kb, kt = jax.random.split(key, 5)

    # input tokens: (B, tokens, c_in)
    x = jax.random.normal(kx, (B, E, C_IN), dtype=jnp.float32)

    # TokenEmbedding Conv1d weight: torch shape (d_model, c_in, 3) -> (3, c_in, d_model)
    w_conv_t = 0.1 * jax.random.normal(kc, (D_MODEL, C_IN, 3), dtype=jnp.float32)
    w_conv = jnp.transpose(w_conv_t, (2, 1, 0))

    # LaplacianEmbedding Linear(42, d_model): torch weight (d_model, 42), bias (d_model,)
    w_lap_t = 0.1 * jax.random.normal(kw, (D_MODEL, LAP_NODE_ID_DIM), dtype=jnp.float32)
    w_lap = w_lap_t.T                                     # (42, d_model)
    b_lap = 0.1 * jax.random.normal(kb, (1, D_MODEL), dtype=jnp.float32)

    # NodeTypeEmbedding: nn.Embedding(2, d_model) table
    type_tab = 0.1 * jax.random.normal(kt, (2, D_MODEL), dtype=jnp.float32)

    # Batch-invariant Laplacian positional encoding (E, 42)
    pe = build_laplacian_pe(edge_indices, node_num, LAP_NODE_ID_DIM // 2)

    # One-time init precompute (hoisted out of the per-call forward).
    w_stack, bias_tiled = build_constants(pe, w_conv, w_lap, b_lap, type_tab,
                                          node_num, B)
    w_stack = jax.block_until_ready(w_stack)
    bias_tiled = jax.block_until_ready(bias_tiled)

    out = data_embedding_forward_jit(x, w_stack, bias_tiled)
    out = jax.block_until_ready(out)

    ref = reference_forward(x, pe, w_conv, w_lap, b_lap, type_tab, node_num)
    assert out.shape == (B, E, D_MODEL), out.shape
    np.testing.assert_allclose(np.asarray(out), np.asarray(ref), atol=1e-3, rtol=1e-3)

    print("KERNEL_OK")
</pallas_src>

<mosaic_0001>
module attributes {stable_mosaic.version = 11 : i64} {
  func.func @_data_embedding_kernel(%arg0: memref<54x12xf32, #tpu.memory_space<vmem>>, %arg1: memref<12x128xf32, #tpu.memory_space<vmem>>, %arg2: memref<54x128xf32, #tpu.memory_space<vmem>>, %arg3: memref<54x128xf32, #tpu.memory_space<vmem>>) attributes {dimension_semantics = [], scalar_prefetch = 0 : i64, scratch_operands = 0 : i64, tpu.core_type = #tpu.core_type<tc>} {
    %c0 = arith.constant 0 : index
    %c0_0 = arith.constant 0 : index
    %0 = vector.load %arg0[%c0, %c0_0] : memref<54x12xf32, #tpu.memory_space<vmem>>, vector<54x12xf32>
    %c0_1 = arith.constant 0 : index
    %c0_2 = arith.constant 0 : index
    %1 = vector.load %arg1[%c0_1, %c0_2] : memref<12x128xf32, #tpu.memory_space<vmem>>, vector<12x128xf32>
    %cst = arith.constant dense<0.000000e+00> : vector<54x128xf32>
    %2 = tpu.matmul %0, %1, %cst {dimension_numbers = #tpu.dot_dimension_numbers<[1], [0], [0], [1], [0, 0, 1, 1], [], []>} : vector<54x12xf32>, vector<12x128xf32>, vector<54x128xf32> -> vector<54x128xf32>
    %c0_3 = arith.constant 0 : index
    %c0_4 = arith.constant 0 : index
    %3 = vector.load %arg2[%c0_3, %c0_4] : memref<54x128xf32, #tpu.memory_space<vmem>>, vector<54x128xf32>
    %4 = arith.addf %2, %3 : vector<54x128xf32>
    %c0_5 = arith.constant 0 : index
    %c0_6 = arith.constant 0 : index
    %5 = vector.load %arg3[%c0_5, %c0_6] : memref<54x128xf32, #tpu.memory_space<vmem>>, vector<54x128xf32>
    tpu.vector_store %arg3[%c0_5, %c0_6], %4 {strides = array<i32>} : memref<54x128xf32, #tpu.memory_space<vmem>>, vector<54x128xf32>,
    return
  }
}

</mosaic_0001>

<bundles_post_ra>
// kernel: data_embedding_forward.1
= control target key start
LH: loop header
LB: loop body
LE: loop exit
PB: predicated region body
PF: predicated region fallthrough
CT: control target
= control target key end

     0   :  { %vm52_vm0 = vcmask 1043456   ;;  %v215_v0 = vmov 0.0   ;;  %vm30_vm1 = vcmask 97280   ;;  %vm216_vm2 = vmmov 0   ;;  %s320_s1 = inlined_call_operand.vmem [shape: f32[12,128], index: 1, kind: input, shape index: {}]   ;;  %s321_s0 = inlined_call_operand.vmem [shape: f32[54,12], index: 0, kind: input, shape index: {}]   ;;  %s322_s2 = inlined_call_operand.vmem [shape: f32[54,128], index: 2, kind: input, shape index: {}]   ;;  %s323_s3 = inlined_call_operand.vmem [shape: f32[54,128], index: 3, kind: output, shape index: {}]  }
   0x1   :  { %184 = vmatprep.subr.mxu0 %v215_v0  ;;  %v22_v1 = vld [vmem:[%s320_s1 + $0x8] sm:$0xf]  ;;  %209 = vmatprep.subr.mxu1 %v215_v0  ;;  %v21_v2 = vld [vmem:[%s320_s1] sm:$0xff]  ;;  %v16_v7 = vld [vmem:[%s321_s0 + $0x10] sm:$0xff] }
   0x2   :  { %185 = vmatpush3.msk.msra.mxu0 %vm52_vm0, %v22_v1  ;;  %211 = vmatpush3.msk.msra.mxu1 %vm52_vm0, %v22_v1  ;;  %v14_v3 = vld [vmem:[%s321_s0] sm:$0xff]  ;;  %v15_v5 = vld [vmem:[%s321_s0 + $0x8] sm:$0xff]  ;;  %v20_v8 = vld [vmem:[%s321_s0 + $0x30] sm:$0x3f] }
   0x3   :  { %186 = vmatprep.subr.mxu0 %v215_v0  ;;  %188 = vmatprep.mubr.msk.f32.mxu0 %vm216_vm2, %v215_v0  ;;  %v18_v4 = vld [vmem:[%s321_s0 + $0x20] sm:$0xff]  ;;  %v19_v6 = vld [vmem:[%s321_s0 + $0x28] sm:$0xff]  ;;  %v17_v9 = vld [vmem:[%s321_s0 + $0x18] sm:$0xff] }
   0x4   :  { %187 = vmatpush3.msra.mxu0 %v21_v2  ;;  %210 = vmatprep.subr.mxu1 %v215_v0  ;;  %v23_v10 = vld [vmem:[%s322_s2] sm:$0xff]  ;;  %v24_v16 = vld [vmem:[%s322_s2 + $0x8] sm:$0xff]  ;;  %v25_v24 = vld [vmem:[%s322_s2 + $0x10] sm:$0xff] }
   0x5   :  { %189 = vmatmul.mubr.msk.f32.vlgmr.msra.gmra.mxu0 %vm30_vm1, %v14_v3  ;;  %212 = vmatpush3.msra.mxu1 %v21_v2  ;;  %v27_v12 = vld [vmem:[%s322_s2 + $0x20] sm:$0xff]  ;;  %v28_v20 = vld [vmem:[%s322_s2 + $0x28] sm:$0xff]  ;;  %v29_v28 = vld [vmem:[%s322_s2 + $0x30] sm:$0x3f] }
   0x6   :  { %200 = vmatprep.mubr.msk.f32.mxu1 %vm216_vm2, %v215_v0  ;;  %191 = vmatprep.mubr.msk.f32.mxu0 %vm216_vm2, %v215_v0  ;;  %v26_v32 = vld [vmem:[%s322_s2 + $0x18] sm:$0xff] }
   0x7   :  { %201 = vmatmul.mubr.msk.f32.vlgmr.msra.gmra.mxu1 %vm30_vm1, %v18_v4 }
   0x8   :  { %203 = vmatprep.mubr.msk.f32.mxu1 %vm216_vm2, %v215_v0 }
   0x9   :  { %192 = vmatmul.mubr.msk.f32.gmra.mxu0 %vm30_vm1, %v15_v5 }
   0xa   :  { %194 = vmatprep.mubr.msk.f32.mxu0 %vm216_vm2, %v215_v0 }
   0xb   :  { %204 = vmatmul.mubr.msk.f32.gmra.mxu1 %vm30_vm1, %v19_v6 }
   0xc   :  { %206 = vmatprep.mubr.msk.f32.mxu1 %vm216_vm2, %v215_v0 }
   0xd   :  { %195 = vmatmul.mubr.msk.f32.gmra.mxu0 %vm30_vm1, %v16_v7 }
   0xe   :  { %197 = vmatprep.mubr.msk.f32.mxu0 %vm216_vm2, %v215_v0 }
   0xf   :  { %207 = vmatmul.mubr.msk.f32.gmra.mxu1 %vm30_vm1, %v20_v8 }
  0x11   :  { %198 = vmatmul.mubr.msk.f32.gmra.mxu0 %vm30_vm1, %v17_v9 }
  0xc5   :  { %v122_v11 = vpop.f32.mrf.mxu0 }
  0xc6   :  { %v123_v13 = vadd.f32 %v122_v11, %v23_v10 }
  0xc7   :  { %v190_v14 = vpop.f32.mrf.mxu0  ;;  %v142_v15 = vpop.f32.mrf.mxu1 }
  0xc8   :  { %156 = vst [vmem:[%s323_s3] sm:$0xff] %v123_v13  ;;  %v143_v17 = vadd.f32 %v142_v15, %v27_v12 }
  0xc9   :  { %v127_v18 = vpop.f32.mrf.mxu0  ;;  %v202_v19 = vpop.f32.mrf.mxu1 }
  0xca   :  { %160 = vst [vmem:[%s323_s3 + $0x20] sm:$0xff] %v143_v17  ;;  %v128_v21 = vadd.f32 %v127_v18, %v24_v16 }
  0xcb   :  { %v193_v22 = vpop.f32.mrf.mxu0  ;;  %v147_v23 = vpop.f32.mrf.mxu1 }
  0xcc   :  { %157 = vst [vmem:[%s323_s3 + $0x8] sm:$0xff] %v128_v21  ;;  %v148_v25 = vadd.f32 %v147_v23, %v28_v20 }
  0xcd   :  { %v132_v26 = vpop.f32.mrf.mxu0  ;;  %v205_v27 = vpop.f32.mrf.mxu1 }
  0xce   :  { %161 = vst [vmem:[%s323_s3 + $0x28] sm:$0xff] %v148_v25  ;;  %v133_v29 = vadd.f32 %v132_v26, %v25_v24 }
  0xcf   :  { %v196_v30 = vpop.f32.mrf.mxu0  ;;  %v152_v31 = vpop.f32.mrf.mxu1 }
  0xd0   :  { %158 = vst [vmem:[%s323_s3 + $0x10] sm:$0xff] %v133_v29  ;;  %v153_v33 = vadd.f32 %v152_v31, %v29_v28 }
  0xd1   :  { %v137_v34 = vpop.f32.mrf.mxu0  ;;  %v208_v35 = vpop.f32.mrf.mxu1 }
  0xd2   :  { %162 = vst [vmem:[%s323_s3 + $0x30] sm:$0x3f] %v153_v33  ;;  %v138_v36 = vadd.f32 %v137_v34, %v26_v32 }
  0xd3   :  { %v199_v37 = vpop.f32.mrf.mxu0 }
  0xd4   :  { %159 = vst [vmem:[%s323_s3 + $0x18] sm:$0xff] %v138_v36 }

</bundles_post_ra>
